<compile_context>
chip_gen: v7x
topology: tpu7x:2x2x1
jax: 0.10.0
libtpu: 0.0.40
codegen_flags: <defaults>
</compile_context>

<pallas_src>
from functools import partial

import jax
import jax.numpy as jnp
from jax import lax
from jax.experimental import pallas as pl
from jax.experimental.pallas import tpu as pltpu


# ----------------------------- fused Pallas kernel ---------------------------


def _tcn_kernel(x_ref, w_ref, b_ref, out_ref, rhs_ref, *,
                K, dilations, L, Pmax, W, slope, mxu_dtype):
    """Fused TCN forward for one batch element (grid axis 0 = batch).

    x_ref   : (1, C, W)              zero-padded input: [Pmax zeros | L | zeros]
    w_ref   : (num_layers, C, 2K*C)  packed weights (0.5 folded in, mxu_dtype)
    b_ref   : (num_layers, C, 1)     packed biases 0.5*(b1+b2), f32
    out_ref : (1, C, W)              x + LeakyReLU(stack(x)), same padded layout
    rhs_ref : (2K*C, W)              VMEM scratch for the shifted-tap matrix
    """
    C = x_ref.shape[1]

    # Halo mask: real data occupies columns [Pmax, Pmax + L).  Re-zeroing the
    # halos after every layer keeps the circular-roll reads (below) correct.
    col = lax.broadcasted_iota(jnp.int32, (C, W), 1)
    keep = (col >= Pmax) & (col < Pmax + L)

    x0 = x_ref[0].astype(jnp.float32)      # load & cast the input exactly once
    act = x0                               # (C, W), halo columns are zero

    for l, di in enumerate(dilations):     # static unroll over layers
        P = (K - 1) * di
        # Build the (2K*C, W) tap matrix directly in VMEM scratch.  Each tap is
        # a circular lane rotation of the full-width activation; wrapped-around
        # columns land in zero halos, so no cross-boundary leakage.
        for k in range(K):
            sc = (P - k * di) % W          # causal (left-padded) branch shift
            sa = (-k * di) % W             # anti-causal (right-padded) shift
            tap_c = act if sc == 0 else pltpu.roll(act, shift=sc, axis=1)
            tap_a = act if sa == 0 else pltpu.roll(act, shift=sa, axis=1)
            rhs_ref[2 * k * C:(2 * k + 2) * C, :] = jnp.concatenate(
                [tap_c, tap_a], axis=0).astype(mxu_dtype)

        # One MXU matmul per layer; 0.5 and both biases are folded into w / b.
        band = jnp.dot(w_ref[l], rhs_ref[...],
                       preferred_element_type=jnp.float32)
        act = jnp.where(keep, band + b_ref[l], 0.0)        # re-zero halos

    # Epilogue (f32): LeakyReLU + residual, one full-width lane-dense store.
    y = jnp.where(act >= 0, act, slope * act)
    out_ref[0] = (x0 + y).astype(out_ref.dtype)


# ----------------------------- wrapper ----------------------------------------


def tcn_forward(x, w_comb, b_comb, dilations, *, K, slope=0.01,
                mxu_dtype=jnp.float32):
    """x: (N, C, L); w_comb: (num_layers, C, 2K*C); b_comb: (num_layers, C, 1).

    Use mxu_dtype=jnp.bfloat16 on v6e/v7x for ~2x MXU throughput (accumulation
    and the epilogue remain f32).
    """
    N, C, L = x.shape
    num_layers = w_comb.shape[0]
    Pmax = (K - 1) * max(dilations)
    # Each batch segment is padded to a 128-lane multiple with >= Pmax zeros on
    # both sides of the data: aligned lane-dense loads/stores + valid rolls.
    W = int(pl.cdiv(L + 2 * Pmax, 128)) * 128

    x_p = jnp.pad(x, ((0, 0), (0, 0), (Pmax, W - Pmax - L)))    # (N, C, W)
    w_comb = w_comb.astype(mxu_dtype)

    kernel = partial(_tcn_kernel, K=K,
                     dilations=tuple(int(d) for d in dilations),
                     L=L, Pmax=Pmax, W=W, slope=float(slope),
                     mxu_dtype=mxu_dtype)

    out_p = pl.pallas_call(
        kernel,
        out_shape=jax.ShapeDtypeStruct((N, C, W), x.dtype),
        grid=(N,),
        in_specs=[
            pl.BlockSpec((1, C, W), lambda n: (n, 0, 0)),
            pl.BlockSpec((num_layers, C, 2 * K * C), lambda n: (0, 0, 0)),
            pl.BlockSpec((num_layers, C, 1), lambda n: (0, 0, 0)),
        ],
        out_specs=pl.BlockSpec((1, C, W), lambda n: (n, 0, 0)),
        scratch_shapes=[pltpu.VMEM((2 * K * C, W), mxu_dtype)],
        compiler_params=pltpu.CompilerParams(
            dimension_semantics=("parallel",),      # feeds both v7x TCs
            vmem_limit_bytes=32 * 1024 * 1024),
    )(x_p, w_comb, b_comb)

    # Lane-dense unpack in the wrapper: drop the halo columns.
    return out_p[:, :, Pmax:Pmax + L]


# ----------------------------- reference (pure JAX) ---------------------------


def _conv1d_ref(x, w, b, di):
    out = jax.lax.conv_general_dilated(
        x, w, window_strides=(1,), padding="VALID", rhs_dilation=(di,),
        dimension_numbers=("NCH", "OIH", "NCH"))
    return out + b[None, :, None]


def tcn_ref(x, layer_params_pt, *, K, slope=0.01):
    out = x
    for (w1, b1, w2, b2, di) in layer_params_pt:
        P = (K - 1) * di
        lp = jnp.pad(out, ((0, 0), (0, 0), (P, 0)))
        rp = jnp.pad(out, ((0, 0), (0, 0), (0, P)))
        out = 0.5 * (_conv1d_ref(lp, w1, b1, di) + _conv1d_ref(rp, w2, b2, di))
    act = jnp.where(out >= 0, out, slope * out)
    return x + act


# ----------------------------- parameter init / packing -----------------------


def init_tcn_params(key, dim, dilation_rate, K):
    """PyTorch-layout params: w (Cout, Cin, K), b (C,), dilation 2**layer."""
    params_pt = []
    bound = 1.0 / jnp.sqrt(jnp.float32(dim * K))
    for layer in range(dilation_rate):
        di = 2 ** layer
        key, k1, k2, k3, k4 = jax.random.split(key, 5)
        w1 = jax.random.uniform(k1, (dim, dim, K), jnp.float32, -bound, bound)
        b1 = jax.random.uniform(k2, (dim,), jnp.float32, -bound, bound)
        w2 = jax.random.uniform(k3, (dim, dim, K), jnp.float32, -bound, bound)
        b2 = jax.random.uniform(k4, (dim,), jnp.float32, -bound, bound)
        params_pt.append((w1, b1, w2, b2, di))
    return params_pt


def pack_tcn_params(params_pt, K):
    """Fold the 0.5 mean and both biases into a single (C, 2K*C) weight/layer.

    Column blocks are interleaved per tap index k: [w1_k | w2_k] so the kernel
    can write both branch taps for one k as a single 2C-row aligned store.
    """
    ws, bs, dils = [], [], []
    for (w1, b1, w2, b2, di) in params_pt:
        blocks = []
        for k in range(K):
            blocks.append(w1[:, :, k])
            blocks.append(w2[:, :, k])
        ws.append(0.5 * jnp.concatenate(blocks, axis=1))      # (C, 2K*C)
        bs.append(0.5 * (b1 + b2)[:, None])                   # (C, 1)
        dils.append(int(di))
    return jnp.stack(ws), jnp.stack(bs), tuple(dils)


# ----------------------------- main -------------------------------------------


if __name__ == "__main__":
    # Small TCN config: dimension=8, dilation_rate=3 (dilations 1,2,4), kernel=5.
    N, C, L = 2, 8, 16
    KERNEL = 5
    DILATION_RATE = 3

    key = jax.random.PRNGKey(0)
    key, xk = jax.random.split(key)
    x = jax.random.normal(xk, (N, C, L), jnp.float32)

    params_pt = init_tcn_params(key, C, DILATION_RATE, KERNEL)
    w_comb, b_comb, dilations = pack_tcn_params(params_pt, KERNEL)

    ref = jax.block_until_ready(tcn_ref(x, params_pt, K=KERNEL))

    # f32 MXU path (exact reference semantics).
    out = jax.block_until_ready(
        tcn_forward(x, w_comb, b_comb, dilations, K=KERNEL))
    assert out.shape == (N, C, L)
    assert jnp.max(jnp.abs(out - ref)) < 1e-4, "Pallas TCN (f32) mismatch"

    # bf16 MXU-input path (recommended on v6e/v7x); f32 accumulation/epilogue.
    out_bf16 = jax.block_until_ready(
        tcn_forward(x, w_comb, b_comb, dilations, K=KERNEL,
                    mxu_dtype=jnp.bfloat16))
    assert jnp.max(jnp.abs(out_bf16 - ref)) < 5e-2, "Pallas TCN (bf16) mismatch"

    print("KERNEL_OK")
</pallas_src>

<mosaic_0001>
module attributes {stable_mosaic.version = 11 : i64} {
  func.func @_tcn_kernel(%arg0: i32, %arg1: memref<1x8x128xf32, #tpu.memory_space<vmem>>, %arg2: memref<3x8x80xf32, #tpu.memory_space<vmem>>, %arg3: memref<3x8x1xf32, #tpu.memory_space<vmem>>, %arg4: memref<1x8x128xf32, #tpu.memory_space<vmem>>, %arg5: memref<80x128xf32, #tpu.memory_space<vmem>>) attributes {dimension_semantics = [#tpu.dimension_semantics<parallel>], iteration_bounds = array<i64: 2>, scalar_prefetch = 0 : i64, scratch_operands = 1 : i64, tpu.core_type = #tpu.core_type<tc>, window_params = [{transform_indices = @transform_0, window_bounds = array<i64: 1, 8, 128>}, {pipeline_mode = #tpu.pipeline_mode<synchronous>, transform_indices = @transform_1, window_bounds = array<i64: 3, 8, 80>}, {pipeline_mode = #tpu.pipeline_mode<synchronous>, transform_indices = @transform_2, window_bounds = array<i64: 3, 8, 1>}, {transform_indices = @transform_3, window_bounds = array<i64: 1, 8, 128>}]} {
    %0 = tpu.iota {dimensions = array<i32: 1>} : vector<8x128xi32>
    %c16_i32 = arith.constant 16 : i32
    %1 = vector.broadcast %c16_i32 : i32 to vector<8x128xi32>
    %2 = arith.cmpi sge, %0, %1 : vector<8x128xi32>
    %c32_i32 = arith.constant 32 : i32
    %3 = vector.broadcast %c32_i32 : i32 to vector<8x128xi32>
    %4 = arith.cmpi slt, %0, %3 : vector<8x128xi32>
    %5 = arith.andi %2, %4 : vector<8x128xi1>
    %c0 = arith.constant 0 : index
    %c0_0 = arith.constant 0 : index
    %c0_1 = arith.constant 0 : index
    %6 = vector.load %arg1[%c0, %c0_0, %c0_1] : memref<1x8x128xf32, #tpu.memory_space<vmem>>, vector<1x8x128xf32>
    %7 = vector.shape_cast %6 : vector<1x8x128xf32> to vector<8x128xf32>
    %c4_i32 = arith.constant 4 : i32
    %8 = tpu.dynamic_rotate %7 by %c4_i32 dim 1 : vector<8x128xf32>, i32 -> vector<8x128xf32>
    %9 = tpu.concatenate %8, %7 in 0 : vector<8x128xf32>, vector<8x128xf32> -> vector<16x128xf32>
    %c0_2 = arith.constant 0 : index
    %c0_3 = arith.constant 0 : index
    %10 = vector.load %arg5[%c0_2, %c0_3] : memref<80x128xf32, #tpu.memory_space<vmem>>, vector<16x128xf32>
    tpu.vector_store %arg5[%c0_2, %c0_3], %9 {strides = array<i32>} : memref<80x128xf32, #tpu.memory_space<vmem>>, vector<16x128xf32>,
    %c3_i32 = arith.constant 3 : i32
    %11 = tpu.dynamic_rotate %7 by %c3_i32 dim 1 : vector<8x128xf32>, i32 -> vector<8x128xf32>
    %c127_i32 = arith.constant 127 : i32
    %12 = tpu.dynamic_rotate %7 by %c127_i32 dim 1 : vector<8x128xf32>, i32 -> vector<8x128xf32>
    %13 = tpu.concatenate %11, %12 in 0 : vector<8x128xf32>, vector<8x128xf32> -> vector<16x128xf32>
    %c16 = arith.constant 16 : index
    %c0_4 = arith.constant 0 : index
    %14 = vector.load %arg5[%c16, %c0_4] : memref<80x128xf32, #tpu.memory_space<vmem>>, vector<16x128xf32>
    tpu.vector_store %arg5[%c16, %c0_4], %13 {strides = array<i32>} : memref<80x128xf32, #tpu.memory_space<vmem>>, vector<16x128xf32>,
    %c2_i32 = arith.constant 2 : i32
    %15 = tpu.dynamic_rotate %7 by %c2_i32 dim 1 : vector<8x128xf32>, i32 -> vector<8x128xf32>
    %c126_i32 = arith.constant 126 : i32
    %16 = tpu.dynamic_rotate %7 by %c126_i32 dim 1 : vector<8x128xf32>, i32 -> vector<8x128xf32>
    %17 = tpu.concatenate %15, %16 in 0 : vector<8x128xf32>, vector<8x128xf32> -> vector<16x128xf32>
    %c32 = arith.constant 32 : index
    %c0_5 = arith.constant 0 : index
    %18 = vector.load %arg5[%c32, %c0_5] : memref<80x128xf32, #tpu.memory_space<vmem>>, vector<16x128xf32>
    tpu.vector_store %arg5[%c32, %c0_5], %17 {strides = array<i32>} : memref<80x128xf32, #tpu.memory_space<vmem>>, vector<16x128xf32>,
    %c1_i32 = arith.constant 1 : i32
    %19 = tpu.dynamic_rotate %7 by %c1_i32 dim 1 : vector<8x128xf32>, i32 -> vector<8x128xf32>
    %c125_i32 = arith.constant 125 : i32
    %20 = tpu.dynamic_rotate %7 by %c125_i32 dim 1 : vector<8x128xf32>, i32 -> vector<8x128xf32>
    %21 = tpu.concatenate %19, %20 in 0 : vector<8x128xf32>, vector<8x128xf32> -> vector<16x128xf32>
    %c48 = arith.constant 48 : index
    %c0_6 = arith.constant 0 : index
    %22 = vector.load %arg5[%c48, %c0_6] : memref<80x128xf32, #tpu.memory_space<vmem>>, vector<16x128xf32>
    tpu.vector_store %arg5[%c48, %c0_6], %21 {strides = array<i32>} : memref<80x128xf32, #tpu.memory_space<vmem>>, vector<16x128xf32>,
    %c124_i32 = arith.constant 124 : i32
    %23 = tpu.dynamic_rotate %7 by %c124_i32 dim 1 : vector<8x128xf32>, i32 -> vector<8x128xf32>
    %24 = tpu.concatenate %7, %23 in 0 : vector<8x128xf32>, vector<8x128xf32> -> vector<16x128xf32>
    %c64 = arith.constant 64 : index
    %c0_7 = arith.constant 0 : index
    %25 = vector.load %arg5[%c64, %c0_7] : memref<80x128xf32, #tpu.memory_space<vmem>>, vector<16x128xf32>
    tpu.vector_store %arg5[%c64, %c0_7], %24 {strides = array<i32>} : memref<80x128xf32, #tpu.memory_space<vmem>>, vector<16x128xf32>,
    %c0_8 = arith.constant 0 : index
    %c0_9 = arith.constant 0 : index
    %c0_10 = arith.constant 0 : index
    %26 = vector.load %arg2[%c0_8, %c0_9, %c0_10] : memref<3x8x80xf32, #tpu.memory_space<vmem>>, vector<1x8x80xf32>
    %27 = vector.shape_cast %26 : vector<1x8x80xf32> to vector<8x80xf32>
    %c0_11 = arith.constant 0 : index
    %c0_12 = arith.constant 0 : index
    %28 = vector.load %arg5[%c0_11, %c0_12] : memref<80x128xf32, #tpu.memory_space<vmem>>, vector<80x128xf32>
    %cst = arith.constant dense<0.000000e+00> : vector<8x128xf32>
    %29 = tpu.matmul %27, %28, %cst {dimension_numbers = #tpu.dot_dimension_numbers<[1], [0], [0], [1], [0, 0, 1, 1], [], []>} : vector<8x80xf32>, vector<80x128xf32>, vector<8x128xf32> -> vector<8x128xf32>
    %c0_13 = arith.constant 0 : index
    %c0_14 = arith.constant 0 : index
    %c0_15 = arith.constant 0 : index
    %30 = vector.load %arg3[%c0_13, %c0_14, %c0_15] : memref<3x8x1xf32, #tpu.memory_space<vmem>>, vector<1x8x1xf32>
    %31 = vector.shape_cast %30 : vector<1x8x1xf32> to vector<8x1xf32>
    %32 = vector.broadcast %31 : vector<8x1xf32> to vector<8x128xf32>
    %33 = arith.addf %29, %32 : vector<8x128xf32>
    %cst_16 = arith.constant 0.000000e+00 : f32
    %34 = vector.broadcast %cst_16 : f32 to vector<8x128xf32>
    %35 = arith.select %5, %33, %34 : vector<8x128xi1>, vector<8x128xf32>
    %c8_i32 = arith.constant 8 : i32
    %36 = tpu.dynamic_rotate %35 by %c8_i32 dim 1 : vector<8x128xf32>, i32 -> vector<8x128xf32>
    %37 = tpu.concatenate %36, %35 in 0 : vector<8x128xf32>, vector<8x128xf32> -> vector<16x128xf32>
    %c0_17 = arith.constant 0 : index
    %c0_18 = arith.constant 0 : index
    %38 = vector.load %arg5[%c0_17, %c0_18] : memref<80x128xf32, #tpu.memory_space<vmem>>, vector<16x128xf32>
    tpu.vector_store %arg5[%c0_17, %c0_18], %37 {strides = array<i32>} : memref<80x128xf32, #tpu.memory_space<vmem>>, vector<16x128xf32>,
    %c6_i32 = arith.constant 6 : i32
    %39 = tpu.dynamic_rotate %35 by %c6_i32 dim 1 : vector<8x128xf32>, i32 -> vector<8x128xf32>
    %c126_i32_19 = arith.constant 126 : i32
    %40 = tpu.dynamic_rotate %35 by %c126_i32_19 dim 1 : vector<8x128xf32>, i32 -> vector<8x128xf32>
    %41 = tpu.concatenate %39, %40 in 0 : vector<8x128xf32>, vector<8x128xf32> -> vector<16x128xf32>
    %c16_20 = arith.constant 16 : index
    %c0_21 = arith.constant 0 : index
    %42 = vector.load %arg5[%c16_20, %c0_21] : memref<80x128xf32, #tpu.memory_space<vmem>>, vector<16x128xf32>
    tpu.vector_store %arg5[%c16_20, %c0_21], %41 {strides = array<i32>} : memref<80x128xf32, #tpu.memory_space<vmem>>, vector<16x128xf32>,
    %c4_i32_22 = arith.constant 4 : i32
    %43 = tpu.dynamic_rotate %35 by %c4_i32_22 dim 1 : vector<8x128xf32>, i32 -> vector<8x128xf32>
    %c124_i32_23 = arith.constant 124 : i32
    %44 = tpu.dynamic_rotate %35 by %c124_i32_23 dim 1 : vector<8x128xf32>, i32 -> vector<8x128xf32>
    %45 = tpu.concatenate %43, %44 in 0 : vector<8x128xf32>, vector<8x128xf32> -> vector<16x128xf32>
    %c32_24 = arith.constant 32 : index
    %c0_25 = arith.constant 0 : index
    %46 = vector.load %arg5[%c32_24, %c0_25] : memref<80x128xf32, #tpu.memory_space<vmem>>, vector<16x128xf32>
    tpu.vector_store %arg5[%c32_24, %c0_25], %45 {strides = array<i32>} : memref<80x128xf32, #tpu.memory_space<vmem>>, vector<16x128xf32>,
    %c2_i32_26 = arith.constant 2 : i32
    %47 = tpu.dynamic_rotate %35 by %c2_i32_26 dim 1 : vector<8x128xf32>, i32 -> vector<8x128xf32>
    %c122_i32 = arith.constant 122 : i32
    %48 = tpu.dynamic_rotate %35 by %c122_i32 dim 1 : vector<8x128xf32>, i32 -> vector<8x128xf32>
    %49 = tpu.concatenate %47, %48 in 0 : vector<8x128xf32>, vector<8x128xf32> -> vector<16x128xf32>
    %c48_27 = arith.constant 48 : index
    %c0_28 = arith.constant 0 : index
    %50 = vector.load %arg5[%c48_27, %c0_28] : memref<80x128xf32, #tpu.memory_space<vmem>>, vector<16x128xf32>
    tpu.vector_store %arg5[%c48_27, %c0_28], %49 {strides = array<i32>} : memref<80x128xf32, #tpu.memory_space<vmem>>, vector<16x128xf32>,
    %c120_i32 = arith.constant 120 : i32
    %51 = tpu.dynamic_rotate %35 by %c120_i32 dim 1 : vector<8x128xf32>, i32 -> vector<8x128xf32>
    %52 = tpu.concatenate %35, %51 in 0 : vector<8x128xf32>, vector<8x128xf32> -> vector<16x128xf32>
    %c64_29 = arith.constant 64 : index
    %c0_30 = arith.constant 0 : index
    %53 = vector.load %arg5[%c64_29, %c0_30] : memref<80x128xf32, #tpu.memory_space<vmem>>, vector<16x128xf32>
    tpu.vector_store %arg5[%c64_29, %c0_30], %52 {strides = array<i32>} : memref<80x128xf32, #tpu.memory_space<vmem>>, vector<16x128xf32>,
    %c1 = arith.constant 1 : index
    %c0_31 = arith.constant 0 : index
    %c0_32 = arith.constant 0 : index
    %54 = vector.load %arg2[%c1, %c0_31, %c0_32] : memref<3x8x80xf32, #tpu.memory_space<vmem>>, vector<1x8x80xf32>
    %55 = vector.shape_cast %54 : vector<1x8x80xf32> to vector<8x80xf32>
    %c0_33 = arith.constant 0 : index
    %c0_34 = arith.constant 0 : index
    %56 = vector.load %arg5[%c0_33, %c0_34] : memref<80x128xf32, #tpu.memory_space<vmem>>, vector<80x128xf32>
    %cst_35 = arith.constant dense<0.000000e+00> : vector<8x128xf32>
    %57 = tpu.matmul %55, %56, %cst_35 {dimension_numbers = #tpu.dot_dimension_numbers<[1], [0], [0], [1], [0, 0, 1, 1], [], []>} : vector<8x80xf32>, vector<80x128xf32>, vector<8x128xf32> -> vector<8x128xf32>
    %c1_36 = arith.constant 1 : index
    %c0_37 = arith.constant 0 : index
    %c0_38 = arith.constant 0 : index
    %58 = vector.load %arg3[%c1_36, %c0_37, %c0_38] : memref<3x8x1xf32, #tpu.memory_space<vmem>>, vector<1x8x1xf32>
    %59 = vector.shape_cast %58 : vector<1x8x1xf32> to vector<8x1xf32>
    %60 = vector.broadcast %59 : vector<8x1xf32> to vector<8x128xf32>
    %61 = arith.addf %57, %60 : vector<8x128xf32>
    %cst_39 = arith.constant 0.000000e+00 : f32
    %62 = vector.broadcast %cst_39 : f32 to vector<8x128xf32>
    %63 = arith.select %5, %61, %62 : vector<8x128xi1>, vector<8x128xf32>
    %c16_i32_40 = arith.constant 16 : i32
    %64 = tpu.dynamic_rotate %63 by %c16_i32_40 dim 1 : vector<8x128xf32>, i32 -> vector<8x128xf32>
    %65 = tpu.concatenate %64, %63 in 0 : vector<8x128xf32>, vector<8x128xf32> -> vector<16x128xf32>
    %c0_41 = arith.constant 0 : index
    %c0_42 = arith.constant 0 : index
    %66 = vector.load %arg5[%c0_41, %c0_42] : memref<80x128xf32, #tpu.memory_space<vmem>>, vector<16x128xf32>
    tpu.vector_store %arg5[%c0_41, %c0_42], %65 {strides = array<i32>} : memref<80x128xf32, #tpu.memory_space<vmem>>, vector<16x128xf32>,
    %c12_i32 = arith.constant 12 : i32
    %67 = tpu.dynamic_rotate %63 by %c12_i32 dim 1 : vector<8x128xf32>, i32 -> vector<8x128xf32>
    %c124_i32_43 = arith.constant 124 : i32
    %68 = tpu.dynamic_rotate %63 by %c124_i32_43 dim 1 : vector<8x128xf32>, i32 -> vector<8x128xf32>
    %69 = tpu.concatenate %67, %68 in 0 : vector<8x128xf32>, vector<8x128xf32> -> vector<16x128xf32>
    %c16_44 = arith.constant 16 : index
    %c0_45 = arith.constant 0 : index
    %70 = vector.load %arg5[%c16_44, %c0_45] : memref<80x128xf32, #tpu.memory_space<vmem>>, vector<16x128xf32>
    tpu.vector_store %arg5[%c16_44, %c0_45], %69 {strides = array<i32>} : memref<80x128xf32, #tpu.memory_space<vmem>>, vector<16x128xf32>,
    %c8_i32_46 = arith.constant 8 : i32
    %71 = tpu.dynamic_rotate %63 by %c8_i32_46 dim 1 : vector<8x128xf32>, i32 -> vector<8x128xf32>
    %c120_i32_47 = arith.constant 120 : i32
    %72 = tpu.dynamic_rotate %63 by %c120_i32_47 dim 1 : vector<8x128xf32>, i32 -> vector<8x128xf32>
    %73 = tpu.concatenate %71, %72 in 0 : vector<8x128xf32>, vector<8x128xf32> -> vector<16x128xf32>
    %c32_48 = arith.constant 32 : index
    %c0_49 = arith.constant 0 : index
    %74 = vector.load %arg5[%c32_48, %c0_49] : memref<80x128xf32, #tpu.memory_space<vmem>>, vector<16x128xf32>
    tpu.vector_store %arg5[%c32_48, %c0_49], %73 {strides = array<i32>} : memref<80x128xf32, #tpu.memory_space<vmem>>, vector<16x128xf32>,
    %c4_i32_50 = arith.constant 4 : i32
    %75 = tpu.dynamic_rotate %63 by %c4_i32_50 dim 1 : vector<8x128xf32>, i32 -> vector<8x128xf32>
    %c116_i32 = arith.constant 116 : i32
    %76 = tpu.dynamic_rotate %63 by %c116_i32 dim 1 : vector<8x128xf32>, i32 -> vector<8x128xf32>
    %77 = tpu.concatenate %75, %76 in 0 : vector<8x128xf32>, vector<8x128xf32> -> vector<16x128xf32>
    %c48_51 = arith.constant 48 : index
    %c0_52 = arith.constant 0 : index
    %78 = vector.load %arg5[%c48_51, %c0_52] : memref<80x128xf32, #tpu.memory_space<vmem>>, vector<16x128xf32>
    tpu.vector_store %arg5[%c48_51, %c0_52], %77 {strides = array<i32>} : memref<80x128xf32, #tpu.memory_space<vmem>>, vector<16x128xf32>,
    %c112_i32 = arith.constant 112 : i32
    %79 = tpu.dynamic_rotate %63 by %c112_i32 dim 1 : vector<8x128xf32>, i32 -> vector<8x128xf32>
    %80 = tpu.concatenate %63, %79 in 0 : vector<8x128xf32>, vector<8x128xf32> -> vector<16x128xf32>
    %c64_53 = arith.constant 64 : index
    %c0_54 = arith.constant 0 : index
    %81 = vector.load %arg5[%c64_53, %c0_54] : memref<80x128xf32, #tpu.memory_space<vmem>>, vector<16x128xf32>
    tpu.vector_store %arg5[%c64_53, %c0_54], %80 {strides = array<i32>} : memref<80x128xf32, #tpu.memory_space<vmem>>, vector<16x128xf32>,
    %c2 = arith.constant 2 : index
    %c0_55 = arith.constant 0 : index
    %c0_56 = arith.constant 0 : index
    %82 = vector.load %arg2[%c2, %c0_55, %c0_56] : memref<3x8x80xf32, #tpu.memory_space<vmem>>, vector<1x8x80xf32>
    %83 = vector.shape_cast %82 : vector<1x8x80xf32> to vector<8x80xf32>
    %c0_57 = arith.constant 0 : index
    %c0_58 = arith.constant 0 : index
    %84 = vector.load %arg5[%c0_57, %c0_58] : memref<80x128xf32, #tpu.memory_space<vmem>>, vector<80x128xf32>
    %cst_59 = arith.constant dense<0.000000e+00> : vector<8x128xf32>
    %85 = tpu.matmul %83, %84, %cst_59 {dimension_numbers = #tpu.dot_dimension_numbers<[1], [0], [0], [1], [0, 0, 1, 1], [], []>} : vector<8x80xf32>, vector<80x128xf32>, vector<8x128xf32> -> vector<8x128xf32>
    %c2_60 = arith.constant 2 : index
    %c0_61 = arith.constant 0 : index
    %c0_62 = arith.constant 0 : index
    %86 = vector.load %arg3[%c2_60, %c0_61, %c0_62] : memref<3x8x1xf32, #tpu.memory_space<vmem>>, vector<1x8x1xf32>
    %87 = vector.shape_cast %86 : vector<1x8x1xf32> to vector<8x1xf32>
    %88 = vector.broadcast %87 : vector<8x1xf32> to vector<8x128xf32>
    %89 = arith.addf %85, %88 : vector<8x128xf32>
    %cst_63 = arith.constant 0.000000e+00 : f32
    %90 = vector.broadcast %cst_63 : f32 to vector<8x128xf32>
    %91 = arith.select %5, %89, %90 : vector<8x128xi1>, vector<8x128xf32>
    %cst_64 = arith.constant 0.000000e+00 : f32
    %92 = vector.broadcast %cst_64 : f32 to vector<8x128xf32>
    %93 = arith.cmpf oge, %91, %92 : vector<8x128xf32>
    %cst_65 = arith.constant 0.00999999977 : f32
    %94 = vector.broadcast %cst_65 : f32 to vector<8x128xf32>
    %95 = arith.mulf %94, %91 : vector<8x128xf32>
    %96 = arith.select %93, %91, %95 : vector<8x128xi1>, vector<8x128xf32>
    %97 = arith.addf %7, %96 : vector<8x128xf32>
    %c0_66 = arith.constant 0 : index
    %c0_67 = arith.constant 0 : index
    %c0_68 = arith.constant 0 : index
    %98 = vector.load %arg4[%c0_66, %c0_67, %c0_68] : memref<1x8x128xf32, #tpu.memory_space<vmem>>, vector<1x8x128xf32>
    %99 = vector.shape_cast %98 : vector<1x8x128xf32> to vector<8x128xf32>
    %100 = vector.shape_cast %97 : vector<8x128xf32> to vector<1x8x128xf32>
    tpu.vector_store %arg4[%c0_66, %c0_67, %c0_68], %100 {strides = array<i32>} : memref<1x8x128xf32, #tpu.memory_space<vmem>>, vector<1x8x128xf32>,
    return
  }
  func.func @transform_0(%arg0: i32) -> (i32, i32, i32) {
    %c0_i32 = arith.constant 0 : i32
    %c0_i32_0 = arith.constant 0 : i32
    %c0_i32_1 = arith.constant 0 : i32
    return %arg0, %c0_i32, %c0_i32_0 : i32, i32, i32
  }
  func.func @transform_1(%arg0: i32) -> (i32, i32, i32) {
    %c0_i32 = arith.constant 0 : i32
    %c0_i32_0 = arith.constant 0 : i32
    %c0_i32_1 = arith.constant 0 : i32
    %c0_i32_2 = arith.constant 0 : i32
    return %c0_i32, %c0_i32_0, %c0_i32_1 : i32, i32, i32
  }
  func.func @transform_2(%arg0: i32) -> (i32, i32, i32) {
    %c0_i32 = arith.constant 0 : i32
    %c0_i32_0 = arith.constant 0 : i32
    %c0_i32_1 = arith.constant 0 : i32
    %c0_i32_2 = arith.constant 0 : i32
    return %c0_i32, %c0_i32_0, %c0_i32_1 : i32, i32, i32
  }
  func.func @transform_3(%arg0: i32) -> (i32, i32, i32) {
    %c0_i32 = arith.constant 0 : i32
    %c0_i32_0 = arith.constant 0 : i32
    %c0_i32_1 = arith.constant 0 : i32
    return %arg0, %c0_i32, %c0_i32_0 : i32, i32, i32
  }
}

</mosaic_0001>

<bundles_post_ra>
// kernel: tpu_custom_call.1
= control target key start
LH: loop header
LB: loop body
LE: loop exit
PB: predicated region body
PF: predicated region fallthrough
CT: control target
= control target key end

     0   :  { %8 = vsyncpa [#allocation4], 0  ;;  %s1284_s0 = inlined_call_operand.hbm [shape: f32[2,8,128], index: 0, kind: input, shape index: {}]   ;;  %s1285_s1 = inlined_call_operand.vmem [shape: f32[3,8,80], index: 1, kind: input, shape index: {}]   ;;  %s1286_s2 = inlined_call_operand.vmem [shape: f32[3,8,1], index: 2, kind: input, shape index: {}]   ;;  %s1287_s3 = inlined_call_operand.hbm [shape: f32[2,8,128], index: 3, kind: output, shape index: {}]  }
   0x1   :  { %10 = vsyncpa [#allocation4 + $0x1], 0 }
   0x2   :  { %11 = vsyncpa [#allocation5], 0 }
   0x3   :  { %13 = vsyncpa [#allocation5 + $0x1], 0  ;;  %s1021_s12 = smov 0   ;;  %s1023_s13 = smov 0  }
   0x4   :  { %s1025_s14 = smov 0   ;;  %s1027_s15 = smov 0  }
   0x5 LB: > { %s1042_s16 = sadd.s32 4294967295, %s976_s15   ;;  %s637_s17 = sadd.s32 4294967294, %s976_s15   ;;  %s976_s15 = sphi %s1027_s15, %s1308_s15   ;;  %s972_s14 = sphi %s1025_s14, %s1307_s14   ;;  %s968_s13 = sphi %s1023_s13, %s1306_s13   ;;  %s964_s12 = sphi %s1021_s12, %s1305_s12  }
   0x6   : > { %s1046_s18 = sadd.s32 1, %s976_s15   ;;  %s26_s19 = sadd.s32 1, %s972_s14 }
   0x7   : > { %s23_s20 = ssub.s32 %s976_s15, %s1046_s18  ;;  %p33_p0 = scmp.ne.s32.totalorder %s972_s14, %s968_s13 }
   0x8   : > { %p24_p1 = scmp.eq.s32.totalorder %s23_s20, 0  ;;  %p34_p2 = scmp.eq.s32.totalorder %s976_s15, 0 }
   0x9   : > { %p39_p3 = scmp.ne.s32.totalorder %s968_s13, %s964_s12  ;;  %p40_p4 = scmp.eq.s32.totalorder %s1042_s16, 0 }
   0xa   : > { %s1058_s21 = scalar_select %p24_p1, %s972_s14, %s26_s19  }
   0xb   : > { %p1060_p5 = por %p34_p2, %p33_p0  ;;  %p1064_p6 = por %p40_p4, %p39_p3 }
   0xc   : > { %p105_p7 = scmp.eq.s32.totalorder %s1042_s16, 1  ;;  %p111_p8 = scmp.eq.s32.totalorder %s637_s17, 1 }
   0xd   : > { %p823_p10 = scmp.lt.s32.totalorder %s976_s15, 2  ;;  %s137_s26 = sand.u32 1, %s972_s14  }
   0xe   : > { %p1071_p11 = por %p105_p7, %p33_p0  ;;  %p1075_p12 = por %p111_p8, %p39_p3 }
   0xf   : > { %s641_s27 = sshll.u32 %s976_s15, 7  ;;  %s640_s28 = sshll.u32 %s137_s26, 3 }
  0x10   : > { %s1291_s24 = scalar_select %p1071_p11, 1, 0 }
  0x11   : > { %s1292_s25 = scalar_select %p1075_p12, 1, 0 }
  0x12   : > { %s1084_s4 = scalar_lea.hbm %s1284_s0, %s641_s27  ;;  %s141_s5 = scalar_lea.vmem [#allocation3], %s640_s28 }
  0x13   : > { %s148_s6 = sshll.u32 %s141_s5, 4  ;;  %p1088_p13 = pnand %p823_p10, %p1060_p5  ;;  %s1092_s6 = int_to_ptr.vmem [resolvable:$true] %s148_s6 }
  0x14   : > { %s138_s8 = scalar_lea.sflag [#allocation4], %s137_s26  ;;  %s880_s9 = scalar_lea.hbm %s1084_s4, 128 }
  0x15   : > { %p881_p2 = scmp.ne.s32.totalorder %s1084_s4, %s880_s9  ;;  %p882_p3 = pneg %p1088_p13 }
  0x16   : > { %s885_s17 = scalar_lea.hbm %s1284_s0, 256  ;;  %p886_p5 = scmp.lt.u32.totalorder %s1084_s4, %s1284_s0 }
  0x17   : > { %p883_p4 = pnand %p882_p3, %p881_p2  ;;  %p887_p8 = scmp.lt.u32.totalorder %s885_s17, %s880_s9 }
  0x18   : > { %p889_p9 = scmp.lt.u32.totalorder %s880_s9, %s1084_s4 }
  0x19   : > { %p884_p7 = pneg %p883_p4  ;;  %p888_p10 = por %p887_p8, %p886_p5 }
  0x1b   : > { %p890_p0 = por %p889_p9, %p888_p10 }
  0x1d   : > { %p891_p1 = pnand %p890_p0, %p884_p7 }
  0x1f   : > { %894 = shalt.err (!%p891_p1)
}
  0x20   : > { %s895_s22 = scalar_lea.vmem %s1092_s6, 128  ;;  %s978_s26 = smov [#allocation3]  }
  0x21   : > { %p896_p2 = scmp.ne.s32.totalorder %s1092_s6, %s895_s22  ;;  %s900_s27 = sshll.u32 %s978_s26, 4  ;;  %s901_s27 = int_to_ptr.vmem [resolvable:$false] %s900_s27 }
  0x22   : > { %s902_s28 = scalar_lea.vmem %s901_s27, 256  ;;  %p903_p11 = scmp.lt.s32.totalorder %s1092_s6, %s901_s27 }
  0x23   : > { %p898_p4 = pnand %p896_p2, %p882_p3  ;;  %p904_p5 = scmp.lt.s32.totalorder %s902_s28, %s895_s22 }
  0x25   : > { %p899_p12 = pneg %p898_p4  ;;  %p905_p8 = por %p904_p5, %p903_p11 }
  0x27   : > { %p906_p9 = pnand %p905_p8, %p899_p12 }
  0x29   : > { %909 = shalt.err (!%p906_p9)
}
  0x2a   : > { %818 = dma.hbm_to_vmem [thread:$0]  (!%p1088_p13), %s1084_s4, 128, %s1092_s6, %s138_s8  }
  0x2b   : > { %p1294_p0 = scmp.lt.s32.totalorder %s976_s15, 3  ;;  %p1295_p1 = scmp.ge.s32.totalorder %s976_s15, 1 }
  0x2d   : > { %p154_p3 = pnand %p1295_p1, %p1294_p0 }
  0x2e   : > { %s1126_s29 = sand.u32 (!%p154_p3), 1, %s968_s13  }
  0x2f   : > { %157 = sbr.rel (%p154_p3) target bundleno = 1129 (0x469), region = 32  ;;  %s643_s30 = sshll.u32 (!%p154_p3), %s1126_s29, 3 }
  0x30   : > { %s160_s5 = scalar_lea.sflag (!%p154_p3), [#allocation4], %s1126_s29  ;;  %s163_s7 = scalar_lea.vmem (!%p154_p3), [#allocation3], %s643_s30 }
  0x36   : > { %955 = dma.done.wait (%p1064_p6), %s160_s5, 128  }
  0x37   : > { %957 = vsyncadd (%p1064_p6), %s160_s5, 4294967168  ;;  %v979_v0 = vmov 0.0|0.0   ;;  %v1138_v1 = vld [vmem:[%s163_s7] sm:$0xff]  ;;  %s980_s4 = smov 4   ;;  %s981_s6 = smov 127   ;;  %vm984_vm0 = vmmov 0   ;;  %v186_v19 = vlaneseq }
  0x38   : > { %762 = vmatprep.subr.bf16.mxu0 %v979_v0  ;;  %777 = vmatprep.subr.bf16.mxu1 %v979_v0  ;;  %s982_s8 = smov 3   ;;  %s983_s9 = smov 2   ;;  %v985_v2 = vmov 0.0   ;;  %v988_v3 = vmov 0   ;;  %v229_v4 = vld [vmem:[%s1286_s2] sm:$0xff]  ;;  %vm235_vm1 = vcmask 654336  }
  0x39   : > { %192 = vrot.lane.b32.xlu0 %v1138_v1, %s980_s4  ;;  %198 = vrot.lane.b32.xlu1 %v1138_v1, %s981_s6  ;;  %s986_s23 = smov 126   ;;  %s987_s10 = smov 1   ;;  %v218_v18 = vld [vmem:[%s1285_s1] sm:$0xff]  ;;  %v187_v20 = vand.u32 127, %v186_v19  ;;  %v647_v27 = vld [vmem:[%s1286_s2 + $0x8] sm:$0xff]  ;;  %vm995_vm5 = vmmov 1  }
  0x3a   : > { %713 = vmatprep.mubr.msk.f32.mxu0 %vm984_vm0, %v985_v2  ;;  %736 = vmatprep.mubr.msk.f32.mxu1 %vm984_vm0, %v985_v2  ;;  %s989_s11 = smov 125   ;;  %s990_s17 = smov 124   ;;  %v646_v43 = vld [vmem:[%s1285_s1 + $0x8] sm:$0xff]  ;;  %v650_v49 = vld [vmem:[%s1286_s2 + $0x10] sm:$0xff] }
  0x3b   : > { %878 = vset.pattern.permute.xlu0 %v988_v3  ;;  %879 = vset.pattern.permute.xlu1 %v988_v3  ;;  %vm188_vm2 = vcmp.ge.s32.totalorder %v187_v20, 16  ;;  %vm189_vm3 = vcmp.lt.s32.totalorder %v187_v20, 32  ;;  %s991_s27 = smov 8   ;;  %s992_s28 = smov 6   ;;  %v649_v63 = vld [vmem:[%s1285_s1 + $0x10] sm:$0xff] }
  0x3c   : > { %vm1169_vm4 = vmand %vm188_vm2, %vm189_vm3  ;;  %s993_s5 = smov 122   ;;  %s998_s19 = smov 112  }
  0x3d   : > { %196 = vrot.lane.b32.xlu0 %v1138_v1, %s982_s8  ;;  %202 = vrot.lane.b32.xlu1 %v1138_v1, %s983_s9  ;;  %s994_s8 = smov 120   ;;  %vm1187_vm6 = vmpackc.low %vm1169_vm4, %vm995_vm5  ;;  %s999_s20 = smov 116  }
  0x3e   : > { %vm1200_vm7 = vmpackc.low %vm995_vm5, %vm1169_vm4  ;;  %p1302_p11 = scmp.ne.s32.totalorder %s1291_s24, 0 }
  0x41   : > { %204 = vrot.lane.b32.xlu0 %v1138_v1, %s986_s23  ;;  %208 = vrot.lane.b32.xlu1 %v1138_v1, %s987_s10  ;;  %s996_s10 = smov 12  }
  0x45   : > { %210 = vrot.lane.b32.xlu0 %v1138_v1, %s989_s11  ;;  %214 = vrot.lane.b32.xlu1 %v1138_v1, %s990_s17  ;;  %s997_s11 = smov 16  }
  0x49   : > { %232 = vperm.xlu0 %878, %v229_v4  }
  0xab   : > { %v193_v5 = vpop.permute.xlu0 %192  ;;  %v199_v6 = vpop.permute.xlu1 %198 }
  0xac   : > { %v763_v7 = vpack.c.bf16 %v1138_v1, %v193_v5 }
  0xae   : > { %764 = vmatpush3.bf16.msra.mxu0 %v763_v7 }
  0xaf   : > { %v197_v8 = vpop.permute.xlu0 %196  ;;  %765 = vmatprep.subr.bf16.mxu0 %v979_v0  ;;  %v203_v9 = vpop.permute.xlu1 %202 }
  0xb0   : > { %v766_v10 = vpack.c.bf16 %v199_v6, %v197_v8 }
  0xb2   : > { %767 = vmatpush3.bf16.msra.mxu0 %v766_v10 }
  0xb3   : > { %v205_v11 = vpop.permute.xlu0 %204  ;;  %768 = vmatprep.subr.bf16.mxu0 %v979_v0  ;;  %v209_v12 = vpop.permute.xlu1 %208 }
  0xb4   : > { %v769_v13 = vpack.c.bf16 %v205_v11, %v203_v9 }
  0xb6   : > { %770 = vmatpush3.bf16.msra.mxu0 %v769_v13 }
  0xb7   : > { %v211_v14 = vpop.permute.xlu0 %210  ;;  %771 = vmatprep.subr.bf16.mxu0 %v979_v0  ;;  %v215_v15 = vpop.permute.xlu1 %214 }
  0xb8   : > { %v772_v16 = vpack.c.bf16 %v211_v14, %v209_v12  ;;  %v775_v17 = vpack.c.bf16 %v215_v15, %v1138_v1 }
  0xba   : > { %773 = vmatpush3.bf16.msra.mxu0 %v772_v16 }
  0xbb   : > { %774 = vmatprep.subr.bf16.mxu0 %v979_v0 }
  0xbe   : > { %776 = vmatpush3.bf16.msra.mxu0 %v775_v17 }
  0xbf   : > { %794 = vmatprep.subr.bf16.mxu0 %v979_v0 }
  0xc1   : > { %714 = vmatmul.mubr.msk.f32.vlgmr.msra.gmra.mrb[0].mxu0 %vm235_vm1, %v218_v18 }
  0xc2   : > { %759 = vmatprep.mubr.msk.f32.mxu0 %vm984_vm0, %v985_v2 }
  0xc8   : > { %v233_v21 = vpop.permute.xlu0 %232 }
 0x194   : > { %v305_v22 = vpop.f32.mrb[0].mxu0 }
 0x195   : > { %v306_v24 = vadd.f32 %v305_v22, %v233_v21  ;;  %v715_v25 = vpop.f32.mrb[1].mxu0 }
 0x197   : > { %v309_v26 = vsel %vm1169_vm4, %v306_v24, 0.0 }
 0x198   : > { %316 = vrot.lane.b32.xlu0 %v309_v26, %s986_s23  ;;  %310 = vrot.lane.b32.xlu1 %v309_v26, %s991_s27 }
 0x19c   : > { %322 = vrot.lane.b32.xlu0 %v309_v26, %s990_s17  ;;  %314 = vrot.lane.b32.xlu1 %v309_v26, %s992_s28  ;;  %s185_s28 = scalar_lea.vmem [#allocation6], %s643_s30 }
 0x1a0   : > { %328 = vrot.lane.b32.xlu0 %v309_v26, %s993_s5  ;;  %320 = vrot.lane.b32.xlu1 %v309_v26, %s980_s4  ;;  %s567_s5 = sshll.u32 %s185_s28, 4  ;;  %s1242_s5 = int_to_ptr.vmem [resolvable:$true] %s567_s5 }
 0x1a1   : > { %s910_s23 = scalar_lea.vmem %s1242_s5, 128 }
 0x1a2   : > { %p911_p6 = scmp.ne.s32.totalorder %s1242_s5, %s910_s23 }
 0x1a4   : > { %352 = vperm.xlu0 %878, %v647_v27   ;;  %326 = vrot.lane.b32.xlu1 %v309_v26, %s983_s9  ;;  %s554_s9 = scalar_lea.sflag [#allocation5], %s1126_s29  ;;  %p912_p12 = pnand %p911_p6, %p1302_p11 }
 0x1a6   : > { %p913_p13 = pneg %p912_p12 }
 0x1a8   : > { %332 = vrot.lane.b32.xlu1 %v309_v26, %s994_s8 }
 0x20a   : > { %v317_v28 = vpop.permute.xlu0 %316  ;;  %v311_v29 = vpop.permute.xlu1 %310 }
 0x20b   : > { %v778_v31 = vpack.c.bf16 %v306_v24, %v311_v29 }
 0x20d   : > { %780 = vmatpush3.bf16.msk.msra.mxu1 %vm1187_vm6, %v778_v31 }
 0x20e   : > { %v315_v32 = vpop.permute.xlu1 %314  ;;  %781 = vmatprep.subr.bf16.mxu1 %v979_v0  ;;  %v323_v34 = vpop.permute.xlu0 %322 }
 0x20f   : > { %v782_v33 = vpack.c.bf16 %v317_v28, %v315_v32 }
 0x211   : > { %783 = vmatpush3.bf16.msra.mxu1 %v782_v33 }
 0x212   : > { %v321_v35 = vpop.permute.xlu1 %320  ;;  %784 = vmatprep.subr.bf16.mxu1 %v979_v0  ;;  %v329_v37 = vpop.permute.xlu0 %328 }
 0x213   : > { %v785_v36 = vpack.c.bf16 %v323_v34, %v321_v35 }
 0x215   : > { %786 = vmatpush3.bf16.msra.mxu1 %v785_v36 }
 0x216   : > { %v327_v38 = vpop.permute.xlu1 %326  ;;  %787 = vmatprep.subr.bf16.mxu1 %v979_v0 }
 0x217   : > { %v788_v39 = vpack.c.bf16 %v329_v37, %v327_v38 }
 0x219   : > { %789 = vmatpush3.bf16.msra.mxu1 %v788_v39 }
 0x21a   : > { %v333_v40 = vpop.permute.xlu1 %332  ;;  %790 = vmatprep.subr.bf16.mxu1 %v979_v0 }
 0x21b   : > { %v791_v42 = vpack.c.bf16 %v333_v40, %v306_v24 }
 0x21d   : > { %793 = vmatpush3.bf16.msk.msra.mxu1 %vm1200_vm7, %v791_v42 }
 0x220   : > { %737 = vmatmul.mubr.msk.f32.vlgmr.msra.gmra.mrb[0].mxu1 %vm235_vm1, %v646_v43 }
 0x223   : > { %v353_v44 = vpop.permute.xlu0 %352 }
 0x2f3   : > { %v424_v45 = vpop.f32.mrb[0].mxu1 }
 0x2f4   : > { %v425_v46 = vadd.f32 %v424_v45, %v353_v44  ;;  %v738_v47 = vpop.f32.mrb[1].mxu1 }
 0x2f6   : > { %v428_v48 = vsel %vm1169_vm4, %v425_v46, 0.0 }
 0x2f7   : > { %433 = vrot.lane.b32.xlu0 %v428_v48, %s996_s10  ;;  %429 = vrot.lane.b32.xlu1 %v428_v48, %s997_s11 }
 0x2fb   : > { %439 = vrot.lane.b32.xlu0 %v428_v48, %s991_s27  ;;  %435 = vrot.lane.b32.xlu1 %v428_v48, %s990_s17  ;;  %s653_s27 = sshll.u32 %s1042_s16, 7  ;;  %s1000_s16 = smov [#allocation6]  }
 0x2fc   : > { %s914_s30 = sshll.u32 %s1000_s16, 4  ;;  %s915_s30 = int_to_ptr.vmem [resolvable:$false] %s914_s30 }
 0x2fd   : > { %s916_s10 = scalar_lea.vmem %s915_s30, 256  ;;  %p917_p7 = scmp.lt.s32.totalorder %s1242_s5, %s915_s30 }
 0x2fe   : > { %p918_p10 = scmp.lt.s32.totalorder %s916_s10, %s910_s23 }
 0x2ff   : > { %445 = vrot.lane.b32.xlu0 %v428_v48, %s980_s4  ;;  %441 = vrot.lane.b32.xlu1 %v428_v48, %s994_s8  ;;  %s1240_s8 = scalar_lea.hbm %s1287_s3, %s653_s27 }
 0x300   : > { %p919_p2 = por %p918_p10, %p917_p7 }
 0x302   : > { %p920_p4 = pnand %p919_p2, %p913_p13 }
 0x303   : > { %451 = vrot.lane.b32.xlu0 %v428_v48, %s998_s19  ;;  %447 = vrot.lane.b32.xlu1 %v428_v48, %s999_s20 }
 0x307   : > { %471 = vperm.xlu1 %879, %v650_v49  }
 0x369   : > { %v434_v50 = vpop.permute.xlu0 %433  ;;  %v430_v51 = vpop.permute.xlu1 %429 }
 0x36a   : > { %v795_v52 = vpack.c.bf16 %v425_v46, %v430_v51 }
 0x36c   : > { %797 = vmatpush3.bf16.msk.msra.mxu0 %vm1187_vm6, %v795_v52 }
 0x36d   : > { %v440_v53 = vpop.permute.xlu0 %439  ;;  %v436_v54 = vpop.permute.xlu1 %435  ;;  %798 = vmatprep.subr.bf16.mxu0 %v979_v0 }
 0x36e   : > { %v799_v55 = vpack.c.bf16 %v436_v54, %v434_v50 }
 0x370   : > { %800 = vmatpush3.bf16.msra.mxu0 %v799_v55 }
 0x371   : > { %v446_v56 = vpop.permute.xlu0 %445  ;;  %v442_v57 = vpop.permute.xlu1 %441  ;;  %801 = vmatprep.subr.bf16.mxu0 %v979_v0 }
 0x372   : > { %v802_v58 = vpack.c.bf16 %v442_v57, %v440_v53 }
 0x374   : > { %803 = vmatpush3.bf16.msra.mxu0 %v802_v58 }
 0x375   : > { %v448_v59 = vpop.permute.xlu1 %447  ;;  %804 = vmatprep.subr.bf16.mxu0 %v979_v0  ;;  %v452_v61 = vpop.permute.xlu0 %451 }
 0x376   : > { %v805_v60 = vpack.c.bf16 %v448_v59, %v446_v56  ;;  %v808_v62 = vpack.c.bf16 %v452_v61, %v425_v46 }
 0x378   : > { %806 = vmatpush3.bf16.msra.mxu0 %v805_v60 }
 0x379   : > { %807 = vmatprep.subr.bf16.mxu0 %v979_v0 }
 0x37c   : > { %810 = vmatpush3.bf16.msk.msra.mxu0 %vm1200_vm7, %v808_v62 }
 0x37f   : > { %760 = vmatmul.mubr.msk.f32.vlgmr.msra.gmra.mrb[2].mxu0 %vm235_vm1, %v649_v63 }
 0x386   : > { %v472_v2 = vpop.permute.xlu1 %471 }
 0x452   : > { %v543_v3 = vpop.f32.mrb[2].mxu0 }
 0x453   : > { %v544_v4 = vadd.f32 %v543_v3, %v472_v2  ;;  %v761_v5 = vpop.f32.mrb[3].mxu0 }
 0x455   : > { %v547_v6 = vsel %vm1169_vm4, %v544_v4, 0.0 }
 0x456   : > { %vm548_vm8 = vcmp.ge.f32.partialorder %v547_v6, 0.0  ;;  %v549_v0 = vmul.f32 0.01, %v547_v6 }
 0x458   : > { %v550_v7 = vsel %vm548_vm8, %v547_v6, %v549_v0 }
 0x459   : > { %v551_v8 = vadd.f32 %v550_v7, %v1138_v1 }
 0x45b   : > { %552 = vst [vmem:[%s185_s28] sm:$0xff] %v551_v8 }
 0x45c   : > { %923 = shalt.err (!%p920_p4)
}
 0x45d   : > { %s924_s29 = scalar_lea.hbm %s1240_s8, 128  ;;  %s928_s20 = scalar_lea.hbm %s1287_s3, 256 }
 0x45e   : > { %p925_p5 = scmp.ne.s32.totalorder %s1240_s8, %s924_s29  ;;  %p929_p0 = scmp.lt.u32.totalorder %s1240_s8, %s1287_s3 }
 0x45f   : > { %p930_p1 = scmp.lt.u32.totalorder %s928_s20, %s924_s29  ;;  %p932_p6 = scmp.lt.u32.totalorder %s924_s29, %s1240_s8 }
 0x460   : > { %p926_p8 = pnand %p925_p5, %p1302_p11 }
 0x461   : > { %p931_p3 = por %p930_p1, %p929_p0 }
 0x462   : > { %p927_p9 = pneg %p926_p8 }
 0x463   : > { %p933_p12 = por %p932_p6, %p931_p3 }
 0x465   : > { %p934_p13 = pnand %p933_p12, %p927_p9 }
 0x467   : > { %937 = shalt.err (!%p934_p13)
}
 0x468   : > { %813 = dma.vmem_to_hbm [thread:$0]  (%p1302_p11), %s1242_s5, 128, %s1240_s8, %s554_s9  }
 0x469 PF: > { %s579_s4 = sand.u32 1, %s964_s12   ;;  %p1303_p7 = scmp.ne.s32.totalorder %s1292_s25, 0 }
 0x46a   : > { %p1304_p10 = scmp.ge.s32.totalorder %s976_s15, 2  ;;  %s580_s17 = scalar_lea.sflag [#allocation5], %s579_s4 }
 0x46c   : > { %p820_p2 = pnand %p1304_p10, %p1303_p7 }
 0x46e   : > { %959 = dma.done.wait (!%p820_p2), %s580_s17, 128  }
 0x46f   : > { %961 = vsyncadd (!%p820_p2), %s580_s17, 4294967168  ;;  %p16_p4 = scmp.ge.s32.totalorder %s1046_s18, 4   ;;  %s1305_s12 = smov %s968_s13 }
 0x470   : > { %s1306_s13 = smov %s972_s14  ;;  %s1307_s14 = smov %s1058_s21 }
 0x471   : > { %s1308_s15 = smov %s1046_s18  ;;  %18 = sbr.rel (!%p16_p4) target bundleno = 5 (0x5), region = 81 }
 0x478   :  { %585 = vsyncpa [#allocation4], 1 }
 0x479   :  { %587 = vsyncpa [#allocation4 + $0x1], 1 }
 0x47a   :  { %588 = vsyncpa [#allocation5], 1 }
 0x47b   :  { %590 = vsyncpa [#allocation5 + $0x1], 1 }

</bundles_post_ra>
